<compile_context>
chip_gen: v7x
topology: tpu7x:2x2x1
jax: 0.10.0
libtpu: 0.0.40
codegen_flags: <defaults>
</compile_context>

<pallas_src>
import jax
import jax.numpy as jnp
from jax.experimental import pallas as pl
from jax.experimental.pallas import tpu as pltpu


def _spatial_attention_kernel(x_ref, m_ref, o_ref):
    # x_ref : (TB, C, HW)   VMEM — TB batch elements, lane-dense spatial axis
    # m_ref : (2, HW, HW)   VMEM — dense conv matrices (constant across grid,
    #                              fetched once by the pipeline)
    # o_ref : (TB, HW)      VMEM — lane-dense output rows
    x = x_ref[...].astype(jnp.float32)          # (TB, C, HW)

    # Channel reduction on the lane-dense view; C is the sublane axis.
    avg = jnp.mean(x, axis=1)                   # (TB, HW)
    mx = jnp.max(x, axis=1)                     # (TB, HW)

    # 2-in / 1-out KxK conv (zero padding folded into M) as two MXU matmuls.
    acc = jnp.dot(avg, m_ref[0], preferred_element_type=jnp.float32)
    acc = acc + jnp.dot(mx, m_ref[1], preferred_element_type=jnp.float32)

    o_ref[...] = jax.nn.sigmoid(acc).astype(o_ref.dtype)


def _conv_matrix(weight, H, W, K, P):
    """Dense (2, H*W, H*W) matrix M with M[c, p_in, p_out] = w[c, dh, dw]
    for the KxK cross-correlation with zero padding P (PyTorch Conv2d)."""
    w = weight.reshape(2, K, K).astype(jnp.float32)
    i_in = jnp.arange(H)[:, None, None, None]    # (H,1,1,1)
    j_in = jnp.arange(W)[None, :, None, None]    # (1,W,1,1)
    i_out = jnp.arange(H)[None, None, :, None]   # (1,1,H,1)
    j_out = jnp.arange(W)[None, None, None, :]   # (1,1,1,W)
    dh = i_in - i_out + P                        # (H,W,H,W)
    dw = j_in - j_out + P
    valid = (dh >= 0) & (dh < K) & (dw >= 0) & (dw < K)
    dh_c = jnp.clip(dh, 0, K - 1)
    dw_c = jnp.clip(dw, 0, K - 1)
    m = w[:, dh_c, dw_c]                         # (2, H, W, H, W)
    m = jnp.where(valid[None], m, 0.0)
    return m.reshape(2, H * W, H * W)


def _pick_tb(B, C, HW):
    """Batch elements per grid step.  Whole batch if it is small; otherwise a
    multiple of 8 (keeps the (8,128) BlockSpec rule happy) sized so the
    double-buffered blocks stay a few MiB — safe even for v7x's 64 MiB VMEM."""
    bytes_per_b = 4 * (C + 1) * HW               # input row + output row, f32
    budget = 4 << 20                             # ~4 MiB of blocks in flight
    if B <= 8 or B * bytes_per_b <= budget:
        return B
    tb = max(8, (budget // bytes_per_b) // 8 * 8)
    return min(tb, (B // 8) * 8)


def spatial_attention(x, weight, kernel_size=7):
    """x: (B, C, H, W); weight: (1, 2, K, K) OIHW, bias-free."""
    assert kernel_size in (3, 7), "kernel size must be 3 or 7"
    K = kernel_size
    P = 3 if K == 7 else 1
    B, C, H, W = x.shape
    HW = H * W
    # Dense conv-matrix approach: keep the (2, HW, HW) weights small in VMEM.
    assert HW <= 1024, "spatial_attention pallas kernel: H*W too large for the dense conv-matrix path"

    M = _conv_matrix(weight, H, W, K, P)         # (2, HW, HW) float32
    x_flat = x.reshape(B, C, HW)                 # free reshape in HBM

    TB = _pick_tb(B, C, HW)
    grid = (pl.cdiv(B, TB),)

    # Generous but explicit scoped-VMEM request (blocks are double-buffered).
    itemsize = 4
    est = (2 * 2 * HW * HW            # M (double buffered)
           + 2 * TB * C * HW          # x block (double buffered)
           + 2 * TB * HW              # out block (double buffered)
           + TB * C * HW + 4 * TB * HW) * itemsize   # in-kernel temporaries
    vmem_limit = int(min(56 << 20, max(32 << 20, 2 * est)))

    out_flat = pl.pallas_call(
        _spatial_attention_kernel,
        out_shape=jax.ShapeDtypeStruct((B, HW), x.dtype),
        grid_spec=pltpu.PrefetchScalarGridSpec(
            num_scalar_prefetch=0,
            grid=grid,
            in_specs=[
                pl.BlockSpec((TB, C, HW), lambda b: (b, 0, 0)),
                pl.BlockSpec((2, HW, HW), lambda b: (0, 0, 0)),
            ],
            out_specs=pl.BlockSpec((TB, HW), lambda b: (b, 0)),
        ),
        compiler_params=pltpu.CompilerParams(
            dimension_semantics=("parallel",),   # batch axis -> megacore-shardable
            vmem_limit_bytes=vmem_limit,
        ),
    )(x_flat, M)

    return out_flat.reshape(B, 1, H, W)


def _reference(x, weight, kernel_size=7):
    P = 3 if kernel_size == 7 else 1
    avg = jnp.mean(x, axis=1, keepdims=True)
    mx = jnp.max(x, axis=1, keepdims=True)
    cat = jnp.concatenate([avg, mx], axis=1)
    out = jax.lax.conv_general_dilated(
        cat, weight, window_strides=(1, 1), padding=[(P, P), (P, P)],
        dimension_numbers=("NCHW", "OIHW", "NCHW"))
    return jax.nn.sigmoid(out)


if __name__ == "__main__":
    key = jax.random.PRNGKey(0)
    kx, kw = jax.random.split(key)

    B, C, H, W = 2, 4, 16, 16
    K = 7

    x = jax.random.normal(kx, (B, C, H, W), dtype=jnp.float32)
    # Deterministic conv weight (kaiming-like scale), shape (out=1, in=2, K, K).
    fan_in = 2 * K * K
    weight = jax.random.normal(kw, (1, 2, K, K), dtype=jnp.float32) * (1.0 / fan_in) ** 0.5

    out = spatial_attention(x, weight, kernel_size=K)
    out = jax.block_until_ready(out)

    ref = _reference(x, weight, kernel_size=K)
    assert out.shape == (B, 1, H, W)
    err = float(jnp.max(jnp.abs(out - ref)))
    assert err < 2e-5, f"max abs error {err}"

    print("KERNEL_OK")
</pallas_src>

<mosaic_0001>
module attributes {stable_mosaic.version = 11 : i64} {
  func.func @_spatial_attention_kernel(%arg0: i32, %arg1: memref<2x4x256xf32, #tpu.memory_space<vmem>>, %arg2: memref<2x256x256xf32, #tpu.memory_space<vmem>>, %arg3: memref<2x256xf32, #tpu.memory_space<vmem>>) attributes {dimension_semantics = [#tpu.dimension_semantics<parallel>], iteration_bounds = array<i64: 1>, scalar_prefetch = 0 : i64, scratch_operands = 0 : i64, tpu.core_type = #tpu.core_type<tc>, window_params = [{transform_indices = @transform_0, window_bounds = array<i64: 2, 4, 256>}, {pipeline_mode = #tpu.pipeline_mode<synchronous>, transform_indices = @transform_1, window_bounds = array<i64: 2, 256, 256>}, {transform_indices = @transform_2, window_bounds = array<i64: 2, 256>}]} {
    %c0 = arith.constant 0 : index
    %c0_0 = arith.constant 0 : index
    %c0_1 = arith.constant 0 : index
    %0 = vector.load %arg1[%c0, %c0_0, %c0_1] : memref<2x4x256xf32, #tpu.memory_space<vmem>>, vector<2x4x256xf32>
    %cst = arith.constant dense<0.000000e+00> : vector<2x256xf32>
    %1 = vector.multi_reduction <add>, %0, %cst [1] : vector<2x4x256xf32> to vector<2x256xf32>
    %cst_2 = arith.constant 4.000000e+00 : f32
    %2 = vector.broadcast %cst_2 : f32 to vector<2x256xf32>
    %3 = arith.divf %1, %2 : vector<2x256xf32>
    %cst_3 = arith.constant dense<0xFF800000> : vector<2x256xf32>
    %4 = vector.multi_reduction <maximumf>, %0, %cst_3 [1] : vector<2x4x256xf32> to vector<2x256xf32>
    %c0_4 = arith.constant 0 : index
    %c0_5 = arith.constant 0 : index
    %c0_6 = arith.constant 0 : index
    %5 = vector.load %arg2[%c0_4, %c0_5, %c0_6] : memref<2x256x256xf32, #tpu.memory_space<vmem>>, vector<1x256x256xf32>
    %6 = vector.shape_cast %5 : vector<1x256x256xf32> to vector<256x256xf32>
    %cst_7 = arith.constant dense<0.000000e+00> : vector<2x256xf32>
    %7 = tpu.matmul %3, %6, %cst_7 {dimension_numbers = #tpu.dot_dimension_numbers<[1], [0], [0], [1], [0, 0, 1, 1], [], []>} : vector<2x256xf32>, vector<256x256xf32>, vector<2x256xf32> -> vector<2x256xf32>
    %c1 = arith.constant 1 : index
    %c0_8 = arith.constant 0 : index
    %c0_9 = arith.constant 0 : index
    %8 = vector.load %arg2[%c1, %c0_8, %c0_9] : memref<2x256x256xf32, #tpu.memory_space<vmem>>, vector<1x256x256xf32>
    %9 = vector.shape_cast %8 : vector<1x256x256xf32> to vector<256x256xf32>
    %cst_10 = arith.constant dense<0.000000e+00> : vector<2x256xf32>
    %10 = tpu.matmul %4, %9, %cst_10 {dimension_numbers = #tpu.dot_dimension_numbers<[1], [0], [0], [1], [0, 0, 1, 1], [], []>} : vector<2x256xf32>, vector<256x256xf32>, vector<2x256xf32> -> vector<2x256xf32>
    %11 = arith.addf %7, %10 : vector<2x256xf32>
    %12 = arith.negf %11 : vector<2x256xf32>
    %13 = math.exp %12 : vector<2x256xf32>
    %cst_11 = arith.constant 1.000000e+00 : f32
    %14 = vector.broadcast %cst_11 : f32 to vector<2x256xf32>
    %15 = arith.addf %14, %13 : vector<2x256xf32>
    %16 = arith.divf %14, %15 : vector<2x256xf32>
    %c0_12 = arith.constant 0 : index
    %c0_13 = arith.constant 0 : index
    %17 = vector.load %arg3[%c0_12, %c0_13] : memref<2x256xf32, #tpu.memory_space<vmem>>, vector<2x256xf32>
    tpu.vector_store %arg3[%c0_12, %c0_13], %16 {strides = array<i32>} : memref<2x256xf32, #tpu.memory_space<vmem>>, vector<2x256xf32>,
    return
  }
  func.func @transform_0(%arg0: i32) -> (i32, i32, i32) {
    %c0_i32 = arith.constant 0 : i32
    %c0_i32_0 = arith.constant 0 : i32
    %c0_i32_1 = arith.constant 0 : i32
    return %arg0, %c0_i32, %c0_i32_0 : i32, i32, i32
  }
  func.func @transform_1(%arg0: i32) -> (i32, i32, i32) {
    %c0_i32 = arith.constant 0 : i32
    %c0_i32_0 = arith.constant 0 : i32
    %c0_i32_1 = arith.constant 0 : i32
    %c0_i32_2 = arith.constant 0 : i32
    return %c0_i32, %c0_i32_0, %c0_i32_1 : i32, i32, i32
  }
  func.func @transform_2(%arg0: i32) -> (i32, i32) {
    %c0_i32 = arith.constant 0 : i32
    %c0_i32_0 = arith.constant 0 : i32
    return %arg0, %c0_i32 : i32, i32
  }
}

</mosaic_0001>

<bundles_post_ra>
// kernel: tpu_custom_call.1
= control target key start
LH: loop header
LB: loop body
LE: loop exit
PB: predicated region body
PF: predicated region fallthrough
CT: control target
= control target key end

     0   :  { %7 = vsyncpa [#allocation3], 0  ;;  %s862_s0 = inlined_call_operand.hbm [shape: f32[2,4,256], index: 0, kind: input, shape index: {}]   ;;  %s863_s1 = inlined_call_operand.hbm [shape: f32[2,256,256], index: 1, kind: input, shape index: {}]   ;;  %s864_s2 = inlined_call_operand.hbm [shape: f32[2,256], index: 2, kind: output, shape index: {}]  }
   0x1   :  { %8 = vsyncpa [#allocation6], 0 }
   0x2   :  { %9 = vsyncpa [#allocation4], 0  ;;  %s660_s9 = smov [#allocation2]   ;;  %s588_s13 = scalar_lea.hbm %s862_s0, 256 }
   0x3   :  { %s15_s10 = sshll.u32 %s660_s9, 4  ;;  %p589_p0 = scmp.ne.s32.totalorder %s862_s0, %s588_s13  ;;  %s16_s10 = int_to_ptr.vmem [resolvable:$true] %s15_s10 }
   0x4   :  { %p592_p1 = scmp.lt.u32.totalorder %s588_s13, %s862_s0 }
   0x6   :  { %p594_p2 = pnand %p592_p1, %p589_p0 }
   0x8   :  { %597 = shalt.err (!%p594_p2)
}
   0x9   :  { %s598_s18 = scalar_lea.vmem %s16_s10, 256  ;;  %p603_p4 = scmp.lt.s32.totalorder %s16_s10, %s16_s10 }
   0xa   :  { %p599_p3 = scmp.ne.s32.totalorder %s16_s10, %s598_s18  ;;  %p604_p5 = scmp.lt.s32.totalorder %s598_s18, %s598_s18 }
   0xc   :  { %p605_p6 = por %p604_p5, %p603_p4 }
   0xe   :  { %p606_p7 = pnand %p605_p6, %p599_p3 }
  0x10   :  { %609 = shalt.err (!%p606_p7)
}
  0x11   :  { %s661_s19 = smov 128   ;;  %s662_s20 = smov 8  }
  0x12   :  { %21 = dma.hbm_to_vmem [thread:$0]  %s862_s0, 256, %s16_s10, [#allocation3], %s661_s19, %s661_s19, %s662_s20  }
  0x13   :  { %s663_s23 = smov [#allocation5]   ;;  %s610_s27 = scalar_lea.hbm %s863_s1, 16384 }
  0x14   :  { %s27_s24 = sshll.u32 %s663_s23, 4  ;;  %p611_p8 = scmp.ne.s32.totalorder %s863_s1, %s610_s27  ;;  %s28_s24 = int_to_ptr.vmem [resolvable:$true] %s27_s24 }
  0x15   :  { %p614_p9 = scmp.lt.u32.totalorder %s610_s27, %s863_s1 }
  0x17   :  { %p616_p10 = pnand %p614_p9, %p611_p8 }
  0x19   :  { %619 = shalt.err (!%p616_p10)
}
  0x1a   :  { %s620_s4 = scalar_lea.vmem %s28_s24, 16384  ;;  %p625_p12 = scmp.lt.s32.totalorder %s28_s24, %s28_s24 }
  0x1b   :  { %p621_p11 = scmp.ne.s32.totalorder %s28_s24, %s620_s4  ;;  %p626_p13 = scmp.lt.s32.totalorder %s620_s4, %s620_s4 }
  0x1d   :  { %p627_p0 = por %p626_p13, %p625_p12 }
  0x1f   :  { %p628_p1 = pnand %p627_p0, %p621_p11 }
  0x21   :  { %631 = shalt.err (!%p628_p1)
}
  0x22   :  { %s664_s0 = smov 256   ;;  %s665_s5 = smov 16  }
  0x23   :  { %33 = dma.hbm_to_vmem [thread:$0]  %s863_s1, 16384, %s28_s24, [#allocation6], %s664_s0, %s664_s0, %s665_s5  }
  0x24   :  { %654 = dma.done.wait [#allocation3], 256  }
  0x25   :  { %655 = vsyncadd [#allocation3], 4294967040 }
  0x26   :  { %656 = dma.done.wait [#allocation6], 16384  }
  0x27   :  { %657 = vsyncadd [#allocation6], 4294950912  ;;  %v176_v0 = vld [vmem:[#allocation5 + $0x208] sm:$0xff]  ;;  %v178_v1 = vld [vmem:[#allocation5 + $0x218] sm:$0xff]  ;;  %vm48_vm0 = vcmask 1043456   ;;  %vm243_vm1 = vcmask 1041409  }
  0x28   :  { %v111_v2 = vld [vmem:[#allocation5 + $0x8] sm:$0xff]  ;;  %v441_v3 = vpack.c.bf16 %v178_v1, %v176_v0  ;;  %v113_v4 = vld [vmem:[#allocation5 + $0x18] sm:$0xff]  ;;  %v175_v5 = vld [vmem:[#allocation5 + $0x200] sm:$0xff]  ;;  %s666_s1 = smov [#allocation7]  }
  0x29   :  { %v177_v6 = vld [vmem:[#allocation5 + $0x210] sm:$0xff]  ;;  %v505_v7 = vpack.c.bf16 %v113_v4, %v111_v2  ;;  %v110_v9 = vld [vmem:[#allocation5] sm:$0xff]  ;;  %v180_v11 = vld [vmem:[#allocation5 + $0x228] sm:$0xff]  ;;  %s428_s8 = sshll.u32 %s666_s1, 4  ;;  %s429_s8 = int_to_ptr.vmem [resolvable:$true] %s428_s8 }
  0x2a   :  { %v443_v8 = vpack.c.bf16 %v177_v6, %v175_v5  ;;  %v112_v10 = vld [vmem:[#allocation5 + $0x10] sm:$0xff]  ;;  %442 = vmatprep.subr.bf16.mxu1 %v441_v3  ;;  %v182_v13 = vld [vmem:[#allocation5 + $0x238] sm:$0xff]  ;;  %v115_v14 = vld [vmem:[#allocation5 + $0x28] sm:$0xff]  ;;  %s632_s9 = scalar_lea.vmem %s429_s8, 64  ;;  %p637_p3 = scmp.lt.s32.totalorder %s429_s8, %s429_s8 }
  0x2b   :  { %v507_v12 = vpack.c.bf16 %v112_v10, %v110_v9  ;;  %v117_v15 = vld [vmem:[#allocation5 + $0x38] sm:$0xff]  ;;  %506 = vmatprep.subr.bf16.mxu0 %v505_v7  ;;  %v445_v16 = vpack.c.bf16 %v182_v13, %v180_v11  ;;  %v179_v18 = vld [vmem:[#allocation5 + $0x220] sm:$0xff]  ;;  %v181_v19 = vld [vmem:[#allocation5 + $0x230] sm:$0xff]  ;;  %p633_p2 = scmp.ne.s32.totalorder %s429_s8, %s632_s9  ;;  %p638_p4 = scmp.lt.s32.totalorder %s632_s9, %s632_s9 }
  0x2c   :  { %444 = vmatpush1.bf16.msra.mxu1 %v443_v8  ;;  %v509_v17 = vpack.c.bf16 %v117_v15, %v115_v14  ;;  %v114_v20 = vld [vmem:[#allocation5 + $0x20] sm:$0xff]  ;;  %v447_v21 = vpack.c.bf16 %v181_v19, %v179_v18  ;;  %v116_v22 = vld [vmem:[#allocation5 + $0x30] sm:$0xff]  ;;  %v184_v23 = vld [vmem:[#allocation5 + $0x248] sm:$0xff] }
  0x2d   :  { %508 = vmatpush1.bf16.msra.mxu0 %v507_v12  ;;  %v186_v24 = vld [vmem:[#allocation5 + $0x258] sm:$0xff]  ;;  %446 = vmatprep.subr.bf16.mxu1 %v445_v16  ;;  %v511_v25 = vpack.c.bf16 %v116_v22, %v114_v20  ;;  %v119_v27 = vld [vmem:[#allocation5 + $0x48] sm:$0xff]  ;;  %v183_v29 = vld [vmem:[#allocation5 + $0x240] sm:$0xff]  ;;  %p639_p5 = por %p638_p4, %p637_p3 }
  0x2e   :  { %510 = vmatprep.subr.bf16.mxu0 %v509_v17  ;;  %v449_v26 = vpack.c.bf16 %v186_v24, %v184_v23  ;;  %v121_v28 = vld [vmem:[#allocation5 + $0x58] sm:$0xff]  ;;  %v185_v31 = vld [vmem:[#allocation5 + $0x250] sm:$0xff]  ;;  %v118_v32 = vld [vmem:[#allocation5 + $0x40] sm:$0xff] }
  0x2f   :  { %v513_v30 = vpack.c.bf16 %v121_v28, %v119_v27  ;;  %v120_v33 = vld [vmem:[#allocation5 + $0x50] sm:$0xff]  ;;  %v451_v34 = vpack.c.bf16 %v185_v31, %v183_v29  ;;  %v188_v35 = vld [vmem:[#allocation5 + $0x268] sm:$0xff]  ;;  %v190_v36 = vld [vmem:[#allocation5 + $0x278] sm:$0xff]  ;;  %p640_p6 = pnand %p639_p5, %p633_p2 }
  0x30   :  { %448 = vmatpush1.bf16.msra.mxu1 %v447_v21  ;;  %v123_v37 = vld [vmem:[#allocation5 + $0x68] sm:$0xff]  ;;  %v515_v38 = vpack.c.bf16 %v120_v33, %v118_v32  ;;  %v453_v39 = vpack.c.bf16 %v190_v36, %v188_v35  ;;  %v125_v40 = vld [vmem:[#allocation5 + $0x78] sm:$0xff]  ;;  %v187_v41 = vld [vmem:[#allocation5 + $0x260] sm:$0xff] }
  0x31   :  { %512 = vmatpush1.bf16.msra.mxu0 %v511_v25  ;;  %450 = vmatprep.subr.bf16.mxu1 %v449_v26  ;;  %v189_v42 = vld [vmem:[#allocation5 + $0x270] sm:$0xff]  ;;  %v517_v43 = vpack.c.bf16 %v125_v40, %v123_v37  ;;  %v122_v44 = vld [vmem:[#allocation5 + $0x60] sm:$0xff]  ;;  %v192_v46 = vld [vmem:[#allocation5 + $0x288] sm:$0xff] }
  0x32   :  { %514 = vmatprep.subr.bf16.mxu0 %v513_v30  ;;  %v124_v45 = vld [vmem:[#allocation5 + $0x70] sm:$0xff]  ;;  %v194_v47 = vld [vmem:[#allocation5 + $0x298] sm:$0xff]  ;;  %v127_v48 = vld [vmem:[#allocation5 + $0x88] sm:$0xff]  ;;  %v455_v50 = vpack.c.bf16 %v189_v42, %v187_v41 }
  0x33   :  { %v129_v49 = vld [vmem:[#allocation5 + $0x98] sm:$0xff]  ;;  %v519_v51 = vpack.c.bf16 %v124_v45, %v122_v44  ;;  %v457_v52 = vpack.c.bf16 %v194_v47, %v192_v46  ;;  %v191_v53 = vld [vmem:[#allocation5 + $0x280] sm:$0xff]  ;;  %v193_v54 = vld [vmem:[#allocation5 + $0x290] sm:$0xff] }
  0x34   :  { %452 = vmatpush1.bf16.msra.mxu1 %v451_v34  ;;  %v126_v55 = vld [vmem:[#allocation5 + $0x80] sm:$0xff]  ;;  %v521_v56 = vpack.c.bf16 %v129_v49, %v127_v48  ;;  %v128_v57 = vld [vmem:[#allocation5 + $0x90] sm:$0xff]  ;;  %v196_v58 = vld [vmem:[#allocation5 + $0x2a8] sm:$0xff]  ;;  %v459_v62 = vpack.c.bf16 %v193_v54, %v191_v53 }
  0x35   :  { %516 = vmatpush1.bf16.msra.mxu0 %v515_v38  ;;  %454 = vmatprep.subr.bf16.mxu1 %v453_v39  ;;  %v198_v59 = vld [vmem:[#allocation5 + $0x2b8] sm:$0xff]  ;;  %v131_v60 = vld [vmem:[#allocation5 + $0xa8] sm:$0xff]  ;;  %v523_v63 = vpack.c.bf16 %v128_v57, %v126_v55  ;;  %v195_v1 = vld [vmem:[#allocation5 + $0x2a0] sm:$0xff] }
  0x36   :  { %518 = vmatprep.subr.bf16.mxu0 %v517_v43  ;;  %v133_v61 = vld [vmem:[#allocation5 + $0xb8] sm:$0xff]  ;;  %v461_v0 = vpack.c.bf16 %v198_v59, %v196_v58  ;;  %v197_v2 = vld [vmem:[#allocation5 + $0x2b0] sm:$0xff]  ;;  %v130_v3 = vld [vmem:[#allocation5 + $0xa0] sm:$0xff] }
  0x37   :  { %v525_v4 = vpack.c.bf16 %v133_v61, %v131_v60  ;;  %v132_v5 = vld [vmem:[#allocation5 + $0xb0] sm:$0xff]  ;;  %v200_v6 = vld [vmem:[#allocation5 + $0x2c8] sm:$0xff]  ;;  %v202_v7 = vld [vmem:[#allocation5 + $0x2d8] sm:$0xff]  ;;  %v463_v10 = vpack.c.bf16 %v197_v2, %v195_v1 }
  0x38   :  { %456 = vmatpush1.bf16.msra.mxu1 %v455_v50  ;;  %v135_v8 = vld [vmem:[#allocation5 + $0xc8] sm:$0xff]  ;;  %v137_v9 = vld [vmem:[#allocation5 + $0xd8] sm:$0xff]  ;;  %v527_v11 = vpack.c.bf16 %v132_v5, %v130_v3  ;;  %v465_v12 = vpack.c.bf16 %v202_v7, %v200_v6  ;;  %v199_v13 = vld [vmem:[#allocation5 + $0x2c0] sm:$0xff] }
  0x39   :  { %520 = vmatpush1.bf16.msra.mxu0 %v519_v51  ;;  %458 = vmatprep.subr.bf16.mxu1 %v457_v52  ;;  %v201_v14 = vld [vmem:[#allocation5 + $0x2d0] sm:$0xff]  ;;  %v134_v15 = vld [vmem:[#allocation5 + $0xc0] sm:$0xff]  ;;  %v529_v16 = vpack.c.bf16 %v137_v9, %v135_v8  ;;  %v204_v18 = vld [vmem:[#allocation5 + $0x2e8] sm:$0xff] }
  0x3a   :  { %522 = vmatprep.subr.bf16.mxu0 %v521_v56  ;;  %v136_v17 = vld [vmem:[#allocation5 + $0xd0] sm:$0xff]  ;;  %v206_v19 = vld [vmem:[#allocation5 + $0x2f8] sm:$0xff]  ;;  %v139_v20 = vld [vmem:[#allocation5 + $0xe8] sm:$0xff]  ;;  %v467_v22 = vpack.c.bf16 %v201_v14, %v199_v13 }
  0x3b   :  { %v141_v21 = vld [vmem:[#allocation5 + $0xf8] sm:$0xff]  ;;  %v531_v23 = vpack.c.bf16 %v136_v17, %v134_v15  ;;  %v469_v24 = vpack.c.bf16 %v206_v19, %v204_v18  ;;  %v203_v25 = vld [vmem:[#allocation5 + $0x2e0] sm:$0xff]  ;;  %v205_v26 = vld [vmem:[#allocation5 + $0x2f0] sm:$0xff] }
  0x3c   :  { %460 = vmatpush1.bf16.msra.mxu1 %v459_v62  ;;  %v138_v27 = vld [vmem:[#allocation5 + $0xe0] sm:$0xff]  ;;  %v533_v28 = vpack.c.bf16 %v141_v21, %v139_v20  ;;  %v140_v29 = vld [vmem:[#allocation5 + $0xf0] sm:$0xff]  ;;  %v208_v30 = vld [vmem:[#allocation5 + $0x308] sm:$0xff]  ;;  %v471_v34 = vpack.c.bf16 %v205_v26, %v203_v25 }
  0x3d   :  { %524 = vmatpush1.bf16.msra.mxu0 %v523_v63  ;;  %462 = vmatprep.subr.bf16.mxu1 %v461_v0  ;;  %v210_v31 = vld [vmem:[#allocation5 + $0x318] sm:$0xff]  ;;  %v143_v32 = vld [vmem:[#allocation5 + $0x108] sm:$0xff]  ;;  %v207_v35 = vld [vmem:[#allocation5 + $0x300] sm:$0xff]  ;;  %v535_v36 = vpack.c.bf16 %v140_v29, %v138_v27 }
  0x3e   :  { %526 = vmatprep.subr.bf16.mxu0 %v525_v4  ;;  %v145_v33 = vld [vmem:[#allocation5 + $0x118] sm:$0xff]  ;;  %v473_v37 = vpack.c.bf16 %v210_v31, %v208_v30  ;;  %v209_v38 = vld [vmem:[#allocation5 + $0x310] sm:$0xff]  ;;  %v142_v39 = vld [vmem:[#allocation5 + $0x100] sm:$0xff] }
  0x3f   :  { %v144_v40 = vld [vmem:[#allocation5 + $0x110] sm:$0xff]  ;;  %v537_v41 = vpack.c.bf16 %v145_v33, %v143_v32  ;;  %v212_v42 = vld [vmem:[#allocation5 + $0x328] sm:$0xff]  ;;  %v214_v43 = vld [vmem:[#allocation5 + $0x338] sm:$0xff]  ;;  %v475_v48 = vpack.c.bf16 %v209_v38, %v207_v35 }
  0x40   :  { %464 = vmatpush1.bf16.msra.mxu1 %v463_v10  ;;  %v147_v44 = vld [vmem:[#allocation5 + $0x128] sm:$0xff]  ;;  %v149_v45 = vld [vmem:[#allocation5 + $0x138] sm:$0xff]  ;;  %v211_v46 = vld [vmem:[#allocation5 + $0x320] sm:$0xff]  ;;  %v539_v53 = vpack.c.bf16 %v144_v40, %v142_v39  ;;  %v477_v54 = vpack.c.bf16 %v214_v43, %v212_v42 }
  0x41   :  { %528 = vmatpush1.bf16.msra.mxu0 %v527_v11  ;;  %466 = vmatprep.subr.bf16.mxu1 %v465_v12  ;;  %v213_v47 = vld [vmem:[#allocation5 + $0x330] sm:$0xff]  ;;  %v706_v49 = vld [vmem:[#allocation5 + $0x120] sm:$0xff]  ;;  %v710_v51 = vld [vmem:[#allocation5 + $0x348] sm:$0xff]  ;;  %v541_v59 = vpack.c.bf16 %v149_v45, %v147_v44 }
  0x42   :  { %530 = vmatprep.subr.bf16.mxu0 %v529_v16  ;;  %v708_v50 = vld [vmem:[#allocation5 + $0x130] sm:$0xff]  ;;  %v712_v52 = vld [vmem:[#allocation5 + $0x358] sm:$0xff]  ;;  %v151_v55 = vld [vmem:[#allocation5 + $0x148] sm:$0xff]  ;;  %v479_v12 = vpack.c.bf16 %v213_v47, %v211_v46 }
  0x43   :  { %v153_v56 = vld [vmem:[#allocation5 + $0x158] sm:$0xff]  ;;  %v714_v57 = vld [vmem:[#allocation5 + $0x340] sm:$0xff]  ;;  %v716_v58 = vld [vmem:[#allocation5 + $0x350] sm:$0xff]  ;;  %v543_v18 = vpack.c.bf16 %v708_v50, %v706_v49  ;;  %v481_v19 = vpack.c.bf16 %v712_v52, %v710_v51 }
  0x44   :  { %468 = vmatpush1.bf16.msra.mxu1 %v467_v22  ;;  %v718_v60 = vld [vmem:[#allocation5 + $0x140] sm:$0xff]  ;;  %v720_v61 = vld [vmem:[#allocation5 + $0x150] sm:$0xff]  ;;  %v722_v62 = vld [vmem:[#allocation5 + $0x368] sm:$0xff] }
  0x45   :  { %532 = vmatpush1.bf16.msra.mxu0 %v531_v23  ;;  %470 = vmatprep.subr.bf16.mxu1 %v469_v24  ;;  %v724_v63 = vld [vmem:[#allocation5 + $0x378] sm:$0xff]  ;;  %v726_v0 = vld [vmem:[#allocation5 + $0x168] sm:$0xff]  ;;  %v730_v2 = vld [vmem:[#allocation5 + $0x360] sm:$0xff]  ;;  %v545_v23 = vpack.c.bf16 %v153_v56, %v151_v55  ;;  %v483_v24 = vpack.c.bf16 %v716_v58, %v714_v57 }
  0x46   :  { %534 = vmatprep.subr.bf16.mxu0 %v533_v28  ;;  %v728_v1 = vld [vmem:[#allocation5 + $0x178] sm:$0xff]  ;;  %v732_v3 = vld [vmem:[#allocation5 + $0x370] sm:$0xff]  ;;  %v734_v4 = vld [vmem:[#allocation5 + $0x160] sm:$0xff]  ;;  %v547_v28 = vpack.c.bf16 %v720_v61, %v718_v60  ;;  %v485_v29 = vpack.c.bf16 %v724_v63, %v722_v62 }
  0x47   :  { %v736_v5 = vld [vmem:[#allocation5 + $0x170] sm:$0xff]  ;;  %v738_v6 = vld [vmem:[#allocation5 + $0x388] sm:$0xff]  ;;  %v740_v7 = vld [vmem:[#allocation5 + $0x398] sm:$0xff]  ;;  %v549_v30 = vpack.c.bf16 %v728_v1, %v726_v0  ;;  %v487_v31 = vpack.c.bf16 %v732_v3, %v730_v2 }
  0x48   :  { %472 = vmatpush1.bf16.msra.mxu1 %v471_v34  ;;  %v742_v8 = vld [vmem:[#allocation5 + $0x188] sm:$0xff]  ;;  %v744_v9 = vld [vmem:[#allocation5 + $0x198] sm:$0xff]  ;;  %v746_v10 = vld [vmem:[#allocation5 + $0x380] sm:$0xff]  ;;  %v551_v35 = vpack.c.bf16 %v736_v5, %v734_v4 }
  0x49   :  { %536 = vmatpush1.bf16.msra.mxu0 %v535_v36  ;;  %474 = vmatprep.subr.bf16.mxu1 %v473_v37  ;;  %v748_v11 = vld [vmem:[#allocation5 + $0x390] sm:$0xff]  ;;  %v750_v13 = vld [vmem:[#allocation5 + $0x180] sm:$0xff]  ;;  %v754_v15 = vld [vmem:[#allocation5 + $0x3a8] sm:$0xff]  ;;  %v489_v36 = vpack.c.bf16 %v740_v7, %v738_v6  ;;  %v553_v37 = vpack.c.bf16 %v744_v9, %v742_v8 }
  0x4a   :  { %538 = vmatprep.subr.bf16.mxu0 %v537_v41  ;;  %v752_v14 = vld [vmem:[#allocation5 + $0x190] sm:$0xff]  ;;  %v756_v16 = vld [vmem:[#allocation5 + $0x3b8] sm:$0xff]  ;;  %v758_v17 = vld [vmem:[#allocation5 + $0x1a8] sm:$0xff]  ;;  %v491_v38 = vpack.c.bf16 %v748_v11, %v746_v10 }
  0x4b   :  { %v764_v20 = vld [vmem:[#allocation5 + $0x1b8] sm:$0xff]  ;;  %v766_v21 = vld [vmem:[#allocation5 + $0x3a0] sm:$0xff]  ;;  %v768_v22 = vld [vmem:[#allocation5 + $0x3b0] sm:$0xff]  ;;  %v555_v41 = vpack.c.bf16 %v752_v14, %v750_v13  ;;  %v493_v42 = vpack.c.bf16 %v756_v16, %v754_v15 }
  0x4c   :  { %476 = vmatpush1.bf16.msra.mxu1 %v475_v48  ;;  %v772_v25 = vld [vmem:[#allocation5 + $0x1a0] sm:$0xff]  ;;  %v774_v26 = vld [vmem:[#allocation5 + $0x1b0] sm:$0xff]  ;;  %v776_v27 = vld [vmem:[#allocation5 + $0x3c8] sm:$0xff]  ;;  %v557_v43 = vpack.c.bf16 %v764_v20, %v758_v17  ;;  %v495_v44 = vpack.c.bf16 %v768_v22, %v766_v21 }
  0x4d   :  { %540 = vmatpush1.bf16.msra.mxu0 %v539_v53  ;;  %478 = vmatprep.subr.bf16.mxu1 %v477_v54  ;;  %v786_v32 = vld [vmem:[#allocation5 + $0x3d8] sm:$0xff]  ;;  %v788_v33 = vld [vmem:[#allocation5 + $0x1c8] sm:$0xff]  ;;  %v800_v39 = vld [vmem:[#allocation5 + $0x3c0] sm:$0xff]  ;;  %v559_v45 = vpack.c.bf16 %v774_v26, %v772_v25 }
  0x4e   :  { %542 = vmatprep.subr.bf16.mxu0 %v541_v59  ;;  %v790_v34 = vld [vmem:[#allocation5 + $0x1d8] sm:$0xff]  ;;  %v802_v40 = vld [vmem:[#allocation5 + $0x3d0] sm:$0xff]  ;;  %v497_v46 = vpack.c.bf16 %v786_v32, %v776_v27  ;;  %v166_v14 = vld [vmem:[#allocation5 + $0x1c0] sm:$0xff] }
  0x4f   :  { %v561_v47 = vpack.c.bf16 %v790_v34, %v788_v33  ;;  %v40_v48 = vld [vmem:[#allocation2] sm:$0xff]  ;;  %v499_v49 = vpack.c.bf16 %v802_v40, %v800_v39  ;;  %v41_v50 = vld [vmem:[#allocation2 + $0x8] sm:$0xff]  ;;  %v235_v17 = vld [vmem:[#allocation5 + $0x3e0] sm:$0xff] }
  0x50   :  { %480 = vmatpush1.bf16.msra.mxu1 %v479_v12  ;;  %v44_v51 = vcombine.high %v40_v48, %v40_v48  ;;  %v82_v52 = vsel %vm48_vm0, %v40_v48, -inf  ;;  %v49_v53 = vsel %vm48_vm0, %v40_v48, 0.0  ;;  %v45_v54 = vcombine.high %v41_v50, %v41_v50  ;;  %v168_v15 = vld [vmem:[#allocation5 + $0x1d0] sm:$0xff]  ;;  %v238_v48 = vld [vmem:[#allocation5 + $0x3f8] sm:$0xff]  ;;  %v170_v22 = vld [vmem:[#allocation5 + $0x1e0] sm:$0xff] }
  0x51   :  { %544 = vmatpush1.bf16.msra.mxu0 %v543_v18  ;;  %482 = vmatprep.subr.bf16.mxu1 %v481_v19  ;;  %v83_v55 = vrot.slane %v82_v52, 4  ;;  %v96_v56 = vsel %vm48_vm0, %v41_v50, -inf  ;;  %v50_v57 = vrot.slane %v49_v53, 4  ;;  %v63_v61 = vsel %vm48_vm0, %v41_v50, 0.0  ;;  %v237_v20 = vld [vmem:[#allocation5 + $0x3f0] sm:$0xff] }
  0x52   :  { %546 = vmatprep.subr.bf16.mxu0 %v545_v23  ;;  %v89_v58 = vsel %vm48_vm0, %v44_v51, -inf  ;;  %v56_v59 = vsel %vm48_vm0, %v44_v51, 0.0  ;;  %v97_v60 = vrot.slane %v96_v56, 4  ;;  %v103_v63 = vsel %vm48_vm0, %v45_v54, -inf }
  0x53   :  { %v90_v62 = vrot.slane %v89_v58, 4  ;;  %v57_v0 = vrot.slane %v56_v59, 4  ;;  %v70_v1 = vsel %vm48_vm0, %v45_v54, 0.0  ;;  %v104_v2 = vrot.slane %v103_v63, 4 }
  0x54   :  { %484 = vmatpush1.bf16.msra.mxu1 %v483_v24  ;;  %v71_v3 = vrot.slane %v70_v1, 4  ;;  %v84_v4 = vmax.f32 %v82_v52, %v83_v55  ;;  %v98_v5 = vmax.f32 %v96_v56, %v97_v60  ;;  %v51_v8 = vadd.f32 %v50_v57, %v49_v53 }
  0x55   :  { %548 = vmatpush1.bf16.msra.mxu0 %v547_v28  ;;  %486 = vmatprep.subr.bf16.mxu1 %v485_v29  ;;  %v91_v6 = vmax.f32 %v89_v58, %v90_v62  ;;  %v58_v7 = vadd.f32 %v57_v0, %v56_v59  ;;  %v64_v9 = vrot.slane %v63_v61, 4  ;;  %v105_v10 = vmax.f32 %v103_v63, %v104_v2  ;;  %v171_v58 = vld [vmem:[#allocation5 + $0x1e8] sm:$0xff]  ;;  %v173_v59 = vld [vmem:[#allocation5 + $0x1f8] sm:$0xff] }
  0x56   :  { %550 = vmatprep.subr.bf16.mxu0 %v549_v30  ;;  %v72_v11 = vadd.f32 %v71_v3, %v70_v1  ;;  %v85_v12 = vrot.slane %v84_v4, 2  ;;  %v99_v13 = vrot.slane %v98_v5, 2  ;;  %v52_v19 = vrot.slane %v51_v8, 2 }
  0x57   :  { %v92_v16 = vrot.slane %v91_v6, 2  ;;  %v59_v18 = vrot.slane %v58_v7, 2  ;;  %v65_v23 = vadd.f32 %v64_v9, %v63_v61  ;;  %v106_v24 = vrot.slane %v105_v10, 2 }
  0x58   :  { %488 = vmatpush1.bf16.msra.mxu1 %v487_v31  ;;  %v73_v28 = vrot.slane %v72_v11, 2  ;;  %v86_v29 = vmax.f32 %v84_v4, %v85_v12  ;;  %v100_v30 = vmax.f32 %v98_v5, %v99_v13  ;;  %v236_v31 = vld [vmem:[#allocation5 + $0x3e8] sm:$0xff]  ;;  %v53_v50 = vadd.f32 %v52_v19, %v51_v8 }
  0x59   :  { %552 = vmatpush1.bf16.msra.mxu0 %v551_v35  ;;  %490 = vmatprep.subr.bf16.mxu1 %v489_v36  ;;  %v93_v35 = vmax.f32 %v91_v6, %v92_v16  ;;  %v60_v36 = vadd.f32 %v59_v18, %v58_v7  ;;  %v66_v51 = vrot.slane %v65_v23, 2  ;;  %v107_v52 = vmax.f32 %v105_v10, %v106_v24 }
  0x5a   :  { %554 = vmatprep.subr.bf16.mxu0 %v553_v37  ;;  %v563_v37 = vpack.c.bf16 %v168_v15, %v166_v14  ;;  %v74_v53 = vadd.f32 %v73_v28, %v72_v11  ;;  %v54_v56 = vrot.slane %v53_v50, 1  ;;  %v501_v57 = vpack.c.bf16 %v238_v48, %v236_v31 }
  0x5b   :  { %v94_v54 = vrot.slane %v93_v35, 1  ;;  %v61_v55 = vrot.slane %v60_v36, 1  ;;  %v108_v60 = vrot.slane %v107_v52, 1  ;;  %v87_v62 = vrot.slane %v86_v29, 1 }
  0x5c   :  { %492 = vmatpush1.bf16.msra.mxu1 %v491_v38  ;;  %v67_v38 = vadd.f32 %v66_v51, %v65_v23  ;;  %v75_v61 = vrot.slane %v74_v53, 1  ;;  %v101_v63 = vrot.slane %v100_v30, 1  ;;  %v55_v2 = vadd.f32 %v54_v56, %v53_v50 }
  0x5d   :  { %556 = vmatpush1.bf16.msra.mxu0 %v555_v41  ;;  %494 = vmatprep.subr.bf16.mxu1 %v493_v42  ;;  %v95_v41 = vmax.f32 %v93_v35, %v94_v54  ;;  %v62_v42 = vadd.f32 %v61_v55, %v60_v36  ;;  %v565_v21 = vpack.c.bf16 %v173_v59, %v171_v58 }
  0x5e   :  { %558 = vmatprep.subr.bf16.mxu0 %v557_v43  ;;  %v68_v0 = vrot.slane %v67_v38, 1  ;;  %v109_v43 = vmax.f32 %v107_v52, %v108_v60  ;;  %v76_v1 = vadd.f32 %v75_v61, %v74_v53  ;;  %v503_v27 = vpack.c.bf16 %v237_v20, %v235_v17 }
  0x5f   :  { %v79_v3 = vmul.f32 0.25, %v62_v42  ;;  %v88_v32 = vmax.f32 %v86_v29, %v87_v62 }
  0x60   :  { %496 = vmatpush1.bf16.msra.mxu1 %v495_v44  ;;  %v172_v44 = vld [vmem:[#allocation5 + $0x1f0] sm:$0xff]  ;;  %v69_v4 = vadd.f32 %v68_v0, %v67_v38  ;;  %v245_v25 = vsel %vm243_vm1, %v109_v43, %v95_v41  ;;  %v81_v26 = vmul.f32 0.25, %v76_v1 }
  0x61   :  { %560 = vmatpush1.bf16.msra.mxu0 %v559_v45  ;;  %498 = vmatprep.subr.bf16.mxu1 %v497_v46  ;;  %v102_v45 = vmax.f32 %v100_v30, %v101_v63  ;;  %v567_v33 = vpack.c.bf16 %v172_v44, %v170_v22  ;;  %v78_v46 = vmul.f32 0.25, %v55_v2 }
  0x62   :  { %562 = vmatprep.subr.bf16.mxu0 %v561_v47  ;;  %312 = vmatprep.mubr.f32.mxu1 %v245_v25  ;;  %v324_v34 = vsel %vm243_vm1, %v81_v26, %v79_v3  ;;  %v80_v47 = vmul.f32 0.25, %v69_v4 }
  0x63   :  { %391 = vmatprep.mubr.f32.mxu0 %v324_v34  ;;  %v244_v5 = vsel %vm243_vm1, %v102_v45, %v88_v32 }
  0x64   :  { %500 = vmatpush1.bf16.msra.mxu1 %v499_v49  ;;  %v323_v39 = vsel %vm243_vm1, %v80_v47, %v78_v46 }
  0x65   :  { %564 = vmatpush1.bf16.msra.mxu0 %v563_v37  ;;  %502 = vmatprep.subr.bf16.mxu1 %v501_v57 }
  0x66   :  { %566 = vmatprep.subr.bf16.mxu0 %v565_v21 }
  0x68   :  { %504 = vmatpush1.bf16.msra.mxu1 %v503_v27 }
  0x69   :  { %568 = vmatpush1.bf16.msra.mxu0 %v567_v33 }
  0x6b   :  { %313 = vmatmul.mubr.f32.vlgmr.msra.gmra.mrb[0].mxu1 %v244_v5 }
  0x6c   :  { %392 = vmatmul.mubr.f32.vlgmr.msra.gmra.mrb[0].mxu0 %v323_v39 }
 0x13e   :  { %v314_v40 = vpop.f32.mrb[0].mxu1 }
 0x13f   :  { %v393_v49 = vpop.f32.mrb[0].mxu0  ;;  %v316_v6 = vpop.f32.mrb[1].mxu1 }
 0x140   :  { %v394_v7 = vadd.f32 %v393_v49, %v314_v40  ;;  %v395_v8 = vpop.f32.mrb[1].mxu0 }
 0x141   :  { %v396_v9 = vadd.f32 %v395_v8, %v316_v6 }
 0x142   :  { %v438_v10 = vmul.f32 -1.442695, %v394_v7 }
 0x143   :  { %v439_v11 = vmul.f32 -1.442695, %v396_v9 }
 0x144   :  { %580 = vpow2.f32 %v438_v10 }
 0x145   :  { %582 = vpow2.f32 %v439_v11 }
 0x14e   :  { %v581_v12 = vpop.eup %580 }
 0x14f   :  { %v583_v13 = vpop.eup %582  ;;  %v404_v14 = vadd.f32 1.0, %v581_v12 }
 0x150   :  { %v405_v15 = vadd.f32 1.0, %v583_v13 }
 0x151   :  { %584 = vrcp.f32 %v404_v14 }
 0x152   :  { %586 = vrcp.f32 %v405_v15 }
 0x15b   :  { %v585_v16 = vpop.eup %584 }
 0x15c   :  { %v587_v18 = vpop.eup %586 }
 0x15d   :  { %v412_v19 = vcombine.low %v585_v16, %v587_v18 }
 0x15f   :  { %440 = vst.sshfl [vmem:[#allocation7] sm:$0x33 pattern:$0x76325410] %v412_v19 }
 0x160   :  { %643 = shalt.err (!%p640_p6)
}
 0x161   :  { %s644_s12 = scalar_lea.hbm %s864_s2, 64 }
 0x162   :  { %p645_p7 = scmp.ne.s32.totalorder %s864_s2, %s644_s12  ;;  %p648_p8 = scmp.lt.u32.totalorder %s644_s12, %s864_s2 }
 0x164   :  { %p650_p9 = pnand %p648_p8, %p645_p7 }
 0x166   :  { %653 = shalt.err (!%p650_p9)
}
 0x167   :  { %431 = dma.vmem_to_hbm [thread:$0]  %s429_s8, 64, %s864_s2, [#allocation4]  }
 0x168   :  { %658 = dma.done.wait [#allocation4], 64  }
 0x169   :  { %659 = vsyncadd [#allocation4], 4294967232 }
 0x16a   :  { %435 = vsyncpa [#allocation3], 1 }
 0x16b   :  { %436 = vsyncpa [#allocation6], 1 }
 0x16c   :  { %437 = vsyncpa [#allocation4], 1 }

</bundles_post_ra>
